<compile_context>
chip_gen: v7x
topology: tpu7x:2x2x1
jax: 0.10.0
libtpu: 0.0.40
codegen_flags: <defaults>
</compile_context>

<pallas_src>
import math

import jax
import jax.numpy as jnp
from jax.experimental import pallas as pl
from jax.experimental.pallas import tpu as pltpu


def history_attention_kernel(idx_ref, embq_ref, posq_ref, wlb_ref, out_ref):
    # idx_ref : (BB, W, L) int32   char indices of BB windows
    # embq_ref: (V1, Dq)   f32     embedding @ Wq     (prefused in wrapper)
    # posq_ref: (W, Dq)    f32     pos_enc @ Wq + bq  (prefused in wrapper)
    # wlb_ref : (W, 1)     f32     loss-coef weight (transposed), bias folded in
    # out_ref : (BB, W)    f32     sigmoid(loss weights) for BB windows
    BB, W, L = idx_ref.shape
    V1, Dq = embq_ref.shape

    idx = idx_ref[...]                                            # (BB, W, L)

    # mean-of-char-embeddings as (counts / L) @ (embedding @ Wq).  counts is
    # built with L unrolled VPU compares on a (BB, W, V1) tile (no gather, no
    # 3-D one-hot over L).  Indices outside [0, V1) contribute nothing, which
    # matches the module's zeroed padding row.
    viota = jax.lax.broadcasted_iota(jnp.int32, (BB, W, V1), 2)
    counts = (viota == idx[:, :, 0:1]).astype(jnp.float32)
    for l in range(1, L):
        counts = counts + (viota == idx[:, :, l:l + 1]).astype(jnp.float32)
    mean_onehot = counts * (1.0 / L)                              # (BB, W, V1)

    # Single MXU matmul for the query over the flattened (BB*W, V1) slab,
    # then add the prefused positional/bias term.
    q_flat = jnp.dot(mean_onehot.reshape(BB * W, V1), embq_ref[...],
                     preferred_element_type=jnp.float32)          # (BB*W, Dq)
    query = q_flat.reshape(BB, W, Dq) + posq_ref[...][None]       # (BB, W, Dq)

    # scores = Q Q^T / sqrt(Dq), batched, contracting last dims (no transpose).
    scores = jnp.einsum('bqd,bkd->bqk', query, query,
                        preferred_element_type=jnp.float32)
    scores = scores * (1.0 / math.sqrt(Dq))                       # (BB, W, W) symmetric

    # Row-softmax + Linear(W, 1) + bias, in transposed form using symmetry:
    # column max/sum of a symmetric matrix equal row max/sum.
    cmax = jnp.max(scores, axis=1, keepdims=True)                 # (BB, 1, W)
    e = jnp.exp(scores - cmax)                                    # (BB, W, W)
    wlb = wlb_ref[...]                                            # (W, 1)
    num = jnp.sum(e * wlb[None], axis=1)                          # (BB, W)
    den = jnp.sum(e, axis=1)                                      # (BB, W)
    out_ref[...] = jax.nn.sigmoid(num * pl.reciprocal(den, approx=True))


def history_attention(char_indices, embedding, pos_enc, wq, bq, wl, bl,
                      *, block_b=8):
    """Batched HistoryAttention forward.

    char_indices: (B, W, L) int32 (or (W, L) for a single window)
    embedding:    (char_vocab_size+1, emb_size) f32 (padding row zeroed)
    pos_enc:      (W, emb_size) f32
    wq, bq:       (emb_size, Dq), (1, Dq)   -- Wq stored transposed
    wl, bl:       (W, 1), (1, 1)            -- loss_coef weight transposed
    returns:      (B, W) f32 (or (W,) for a single window)
    """
    squeeze = char_indices.ndim == 2
    if squeeze:
        char_indices = char_indices[None]
    B, W, L = char_indices.shape
    V1, _ = embedding.shape
    Dq = wq.shape[1]

    # Constant-per-forward precomputation (weights / buffers), fused:
    #   query = mean_onehot @ (embedding @ Wq) + (pos_enc @ Wq + bq)
    embq = (embedding @ wq).astype(jnp.float32)                   # (V1, Dq)
    posq = (pos_enc @ wq + bq).astype(jnp.float32)                # (W, Dq)
    # bl folded into wl: softmax rows sum to 1, so attn @ wl + bl == attn @ (wl + bl).
    wlb = (wl + bl).astype(jnp.float32)                           # (W, 1)

    # Pad batch up to a multiple of block_b (padded windows use index 0, which
    # is a valid embedding row; their outputs are sliced off afterwards).
    BB = block_b
    Bp = pl.cdiv(B, BB) * BB
    if Bp != B:
        pad = jnp.zeros((Bp - B, W, L), dtype=char_indices.dtype)
        ci = jnp.concatenate([char_indices, pad], axis=0)
    else:
        ci = char_indices

    out = pl.pallas_call(
        history_attention_kernel,
        out_shape=jax.ShapeDtypeStruct((Bp, W), jnp.float32),
        grid=(Bp // BB,),
        in_specs=[
            pl.BlockSpec((BB, W, L), lambda b: (b, 0, 0)),        # window indices
            pl.BlockSpec((V1, Dq), lambda b: (0, 0)),             # constant
            pl.BlockSpec((W, Dq), lambda b: (0, 0)),              # constant
            pl.BlockSpec((W, 1), lambda b: (0, 0)),               # constant
        ],
        out_specs=pl.BlockSpec((BB, W), lambda b: (b, 0)),
        compiler_params=pltpu.CompilerParams(
            dimension_semantics=("parallel",)),
    )(ci, embq, posq, wlb)

    out = out[:B]                                                 # (B, W)
    return out[0] if squeeze else out


def history_attention_ref(char_indices, embedding, pos_enc, wq, bq, wl, bl):
    """Pure-JAX reference mirroring the PyTorch forward (sigmoid activation)."""
    def one(idx):
        word_embs = embedding[idx].mean(axis=1) + pos_enc
        query = word_embs @ wq + bq
        scores = (query @ query.T) / math.sqrt(wq.shape[1])
        attn = jax.nn.softmax(scores, axis=1)
        logits = attn @ wl + bl
        return jax.nn.sigmoid(logits)[:, 0]
    if char_indices.ndim == 2:
        return one(char_indices)
    return jax.vmap(one)(char_indices)


if __name__ == "__main__":
    char_vocab_size = 20
    emb_size = 32
    Dq = 16
    window_size = 8
    word_len = 5
    batch = 16   # independent windows batched through one pallas_call

    key = jax.random.PRNGKey(0)
    k_idx, k_emb, k_pos, k_wq, k_bq, k_wl, k_bl = jax.random.split(key, 7)

    # indices can include the padding index `char_vocab_size`
    char_indices = jax.random.randint(
        k_idx, (batch, window_size, word_len), 0, char_vocab_size + 1,
        dtype=jnp.int32)

    # register_buffer path (is_emb_train=False): last row is zeroed
    embedding = jax.random.normal(k_emb, (char_vocab_size + 1, emb_size),
                                  dtype=jnp.float32)
    embedding = embedding.at[char_vocab_size, :].set(0.0)

    # positional encodings init to zeros in the module; use small random values
    # here (as a trained parameter would be) so the fusion path is exercised.
    pos_enc = 0.1 * jax.random.normal(k_pos, (window_size, emb_size),
                                      dtype=jnp.float32)

    # Wq: Linear(emb_size, Dq) -> stored transposed (emb_size, Dq), bias (1, Dq)
    wq = 0.1 * jax.random.normal(k_wq, (emb_size, Dq), dtype=jnp.float32)
    bq = 0.1 * jax.random.normal(k_bq, (1, Dq), dtype=jnp.float32)

    # loss_coef_layer: Linear(window_size, 1) -> weight (W, 1), bias (1, 1)
    wl = 0.1 * jax.random.normal(k_wl, (window_size, 1), dtype=jnp.float32)
    bl = 0.1 * jax.random.normal(k_bl, (1, 1), dtype=jnp.float32)

    out = history_attention(char_indices, embedding, pos_enc, wq, bq, wl, bl)
    out = jax.block_until_ready(out)

    ref = history_attention_ref(char_indices, embedding, pos_enc, wq, bq, wl, bl)
    assert out.shape == (batch, window_size)
    # Tolerance relaxed slightly vs. exact arithmetic: the kernel uses the EUP
    # approximate reciprocal for the softmax denominator (~1e-4 relative error).
    assert jnp.allclose(out, ref, rtol=2e-3, atol=2e-4), (out, ref)

    print("KERNEL_OK")
</pallas_src>

<mosaic_0001>
module attributes {stable_mosaic.version = 11 : i64} {
  func.func @history_attention_kernel(%arg0: i32, %arg1: memref<8x8x5xi32, #tpu.memory_space<vmem>>, %arg2: memref<21x16xf32, #tpu.memory_space<vmem>>, %arg3: memref<8x16xf32, #tpu.memory_space<vmem>>, %arg4: memref<8x1xf32, #tpu.memory_space<vmem>>, %arg5: memref<8x8xf32, #tpu.memory_space<vmem>>) attributes {dimension_semantics = [#tpu.dimension_semantics<parallel>], iteration_bounds = array<i64: 2>, scalar_prefetch = 0 : i64, scratch_operands = 0 : i64, tpu.core_type = #tpu.core_type<tc>, window_params = [{transform_indices = @transform_0, window_bounds = array<i64: 8, 8, 5>}, {pipeline_mode = #tpu.pipeline_mode<synchronous>, transform_indices = @transform_1, window_bounds = array<i64: 21, 16>}, {pipeline_mode = #tpu.pipeline_mode<synchronous>, transform_indices = @transform_2, window_bounds = array<i64: 8, 16>}, {pipeline_mode = #tpu.pipeline_mode<synchronous>, transform_indices = @transform_3, window_bounds = array<i64: 8, 1>}, {transform_indices = @transform_4, window_bounds = array<i64: 8, 8>}]} {
    %c0 = arith.constant 0 : index
    %c0_0 = arith.constant 0 : index
    %c0_1 = arith.constant 0 : index
    %0 = vector.load %arg1[%c0, %c0_0, %c0_1] : memref<8x8x5xi32, #tpu.memory_space<vmem>>, vector<8x8x5xi32>
    %1 = tpu.iota {dimensions = array<i32: 2>} : vector<8x8x21xi32>
    %2 = vector.extract_strided_slice %0 {offsets = [0, 0, 0], sizes = [8, 8, 1], strides = [1, 1, 1]} : vector<8x8x5xi32> to vector<8x8x1xi32>
    %3 = vector.broadcast %2 : vector<8x8x1xi32> to vector<8x8x21xi32>
    %4 = arith.cmpi eq, %1, %3 : vector<8x8x21xi32>
    %5 = arith.extui %4 : vector<8x8x21xi1> to vector<8x8x21xi32>
    %6 = arith.sitofp %5 : vector<8x8x21xi32> to vector<8x8x21xf32>
    %7 = vector.extract_strided_slice %0 {offsets = [0, 0, 1], sizes = [8, 8, 1], strides = [1, 1, 1]} : vector<8x8x5xi32> to vector<8x8x1xi32>
    %8 = vector.broadcast %7 : vector<8x8x1xi32> to vector<8x8x21xi32>
    %9 = arith.cmpi eq, %1, %8 : vector<8x8x21xi32>
    %10 = arith.extui %9 : vector<8x8x21xi1> to vector<8x8x21xi32>
    %11 = arith.sitofp %10 : vector<8x8x21xi32> to vector<8x8x21xf32>
    %12 = arith.addf %6, %11 : vector<8x8x21xf32>
    %13 = vector.extract_strided_slice %0 {offsets = [0, 0, 2], sizes = [8, 8, 1], strides = [1, 1, 1]} : vector<8x8x5xi32> to vector<8x8x1xi32>
    %14 = vector.broadcast %13 : vector<8x8x1xi32> to vector<8x8x21xi32>
    %15 = arith.cmpi eq, %1, %14 : vector<8x8x21xi32>
    %16 = arith.extui %15 : vector<8x8x21xi1> to vector<8x8x21xi32>
    %17 = arith.sitofp %16 : vector<8x8x21xi32> to vector<8x8x21xf32>
    %18 = arith.addf %12, %17 : vector<8x8x21xf32>
    %19 = vector.extract_strided_slice %0 {offsets = [0, 0, 3], sizes = [8, 8, 1], strides = [1, 1, 1]} : vector<8x8x5xi32> to vector<8x8x1xi32>
    %20 = vector.broadcast %19 : vector<8x8x1xi32> to vector<8x8x21xi32>
    %21 = arith.cmpi eq, %1, %20 : vector<8x8x21xi32>
    %22 = arith.extui %21 : vector<8x8x21xi1> to vector<8x8x21xi32>
    %23 = arith.sitofp %22 : vector<8x8x21xi32> to vector<8x8x21xf32>
    %24 = arith.addf %18, %23 : vector<8x8x21xf32>
    %25 = vector.extract_strided_slice %0 {offsets = [0, 0, 4], sizes = [8, 8, 1], strides = [1, 1, 1]} : vector<8x8x5xi32> to vector<8x8x1xi32>
    %26 = vector.broadcast %25 : vector<8x8x1xi32> to vector<8x8x21xi32>
    %27 = arith.cmpi eq, %1, %26 : vector<8x8x21xi32>
    %28 = arith.extui %27 : vector<8x8x21xi1> to vector<8x8x21xi32>
    %29 = arith.sitofp %28 : vector<8x8x21xi32> to vector<8x8x21xf32>
    %30 = arith.addf %24, %29 : vector<8x8x21xf32>
    %cst = arith.constant 2.000000e-01 : f32
    %31 = vector.broadcast %cst : f32 to vector<8x8x21xf32>
    %32 = arith.mulf %30, %31 : vector<8x8x21xf32>
    %33 = vector.shape_cast %32 : vector<8x8x21xf32> to vector<64x21xf32>
    %c0_2 = arith.constant 0 : index
    %c0_3 = arith.constant 0 : index
    %34 = vector.load %arg2[%c0_2, %c0_3] : memref<21x16xf32, #tpu.memory_space<vmem>>, vector<21x16xf32>
    %cst_4 = arith.constant dense<0.000000e+00> : vector<64x16xf32>
    %35 = tpu.matmul %33, %34, %cst_4 {dimension_numbers = #tpu.dot_dimension_numbers<[1], [0], [0], [1], [0, 0, 1, 1], [], []>} : vector<64x21xf32>, vector<21x16xf32>, vector<64x16xf32> -> vector<64x16xf32>
    %36 = vector.shape_cast %35 : vector<64x16xf32> to vector<8x8x16xf32>
    %c0_5 = arith.constant 0 : index
    %c0_6 = arith.constant 0 : index
    %37 = vector.load %arg3[%c0_5, %c0_6] : memref<8x16xf32, #tpu.memory_space<vmem>>, vector<8x16xf32>
    %38 = vector.shape_cast %37 : vector<8x16xf32> to vector<1x8x16xf32>
    %39 = vector.broadcast %38 : vector<1x8x16xf32> to vector<8x8x16xf32>
    %40 = arith.addf %36, %39 : vector<8x8x16xf32>
    "tpu.trace_start"() <{level = 10 : i32, message = "bqd,bkd->bqk"}> : () -> ()
    %cst_7 = arith.constant dense<0.000000e+00> : vector<8x8x8xf32>
    %41 = tpu.matmul %40, %40, %cst_7 {dimension_numbers = #tpu.dot_dimension_numbers<[2], [2], [1], [1], [0, 0, 0, 1, 1, 1], [0], [0]>} : vector<8x8x16xf32>, vector<8x8x16xf32>, vector<8x8x8xf32> -> vector<8x8x8xf32>
    "tpu.trace_stop"() : () -> ()
    %cst_8 = arith.constant 2.500000e-01 : f32
    %42 = vector.broadcast %cst_8 : f32 to vector<8x8x8xf32>
    %43 = arith.mulf %41, %42 : vector<8x8x8xf32>
    %cst_9 = arith.constant dense<0xFF800000> : vector<8x8xf32>
    %44 = vector.multi_reduction <maximumf>, %43, %cst_9 [1] : vector<8x8x8xf32> to vector<8x8xf32>
    %45 = vector.shape_cast %44 : vector<8x8xf32> to vector<8x1x8xf32>
    %46 = vector.broadcast %45 : vector<8x1x8xf32> to vector<8x8x8xf32>
    %47 = arith.subf %43, %46 : vector<8x8x8xf32>
    %48 = math.exp %47 : vector<8x8x8xf32>
    %c0_10 = arith.constant 0 : index
    %c0_11 = arith.constant 0 : index
    %49 = vector.load %arg4[%c0_10, %c0_11] : memref<8x1xf32, #tpu.memory_space<vmem>>, vector<8x1xf32>
    %50 = vector.shape_cast %49 : vector<8x1xf32> to vector<1x8x1xf32>
    %51 = vector.broadcast %50 : vector<1x8x1xf32> to vector<8x8x8xf32>
    %52 = arith.mulf %48, %51 : vector<8x8x8xf32>
    %cst_12 = arith.constant dense<0.000000e+00> : vector<8x8xf32>
    %53 = vector.multi_reduction <add>, %52, %cst_12 [1] : vector<8x8x8xf32> to vector<8x8xf32>
    %cst_13 = arith.constant dense<0.000000e+00> : vector<8x8xf32>
    %54 = vector.multi_reduction <add>, %48, %cst_13 [1] : vector<8x8x8xf32> to vector<8x8xf32>
    %55 = tpu.reciprocal %54 {approx = true} : vector<8x8xf32> -> vector<8x8xf32>
    %56 = arith.mulf %53, %55 : vector<8x8xf32>
    %57 = arith.negf %56 : vector<8x8xf32>
    %58 = math.exp %57 : vector<8x8xf32>
    %cst_14 = arith.constant 1.000000e+00 : f32
    %59 = vector.broadcast %cst_14 : f32 to vector<8x8xf32>
    %60 = arith.addf %59, %58 : vector<8x8xf32>
    %61 = arith.divf %59, %60 : vector<8x8xf32>
    %c0_15 = arith.constant 0 : index
    %c0_16 = arith.constant 0 : index
    %62 = vector.load %arg5[%c0_15, %c0_16] : memref<8x8xf32, #tpu.memory_space<vmem>>, vector<8x8xf32>
    tpu.vector_store %arg5[%c0_15, %c0_16], %61 {strides = array<i32>} : memref<8x8xf32, #tpu.memory_space<vmem>>, vector<8x8xf32>,
    return
  }
  func.func @transform_0(%arg0: i32) -> (i32, i32, i32) {
    %c0_i32 = arith.constant 0 : i32
    %c0_i32_0 = arith.constant 0 : i32
    %c0_i32_1 = arith.constant 0 : i32
    return %arg0, %c0_i32, %c0_i32_0 : i32, i32, i32
  }
  func.func @transform_1(%arg0: i32) -> (i32, i32) {
    %c0_i32 = arith.constant 0 : i32
    %c0_i32_0 = arith.constant 0 : i32
    %c0_i32_1 = arith.constant 0 : i32
    return %c0_i32, %c0_i32_0 : i32, i32
  }
  func.func @transform_2(%arg0: i32) -> (i32, i32) {
    %c0_i32 = arith.constant 0 : i32
    %c0_i32_0 = arith.constant 0 : i32
    %c0_i32_1 = arith.constant 0 : i32
    return %c0_i32, %c0_i32_0 : i32, i32
  }
  func.func @transform_3(%arg0: i32) -> (i32, i32) {
    %c0_i32 = arith.constant 0 : i32
    %c0_i32_0 = arith.constant 0 : i32
    %c0_i32_1 = arith.constant 0 : i32
    return %c0_i32, %c0_i32_0 : i32, i32
  }
  func.func @transform_4(%arg0: i32) -> (i32, i32) {
    %c0_i32 = arith.constant 0 : i32
    %c0_i32_0 = arith.constant 0 : i32
    return %arg0, %c0_i32 : i32, i32
  }
}

</mosaic_0001>

<bundles_post_ra>
// kernel: tpu_custom_call.1
= control target key start
LH: loop header
LB: loop body
LE: loop exit
PB: predicated region body
PF: predicated region fallthrough
CT: control target
= control target key end

     0   :  { %s1894_s15 = smov 0   ;;  %s2152_s0 = inlined_call_operand.vmem [shape: s32[16,8,5], index: 0, kind: input, shape index: {}]   ;;  %s2153_s1 = inlined_call_operand.vmem [shape: f32[21,16], index: 1, kind: input, shape index: {}]   ;;  %s2154_s2 = inlined_call_operand.vmem [shape: f32[8,16], index: 2, kind: input, shape index: {}]   ;;  %s2155_s3 = inlined_call_operand.vmem [shape: f32[8,1], index: 3, kind: input, shape index: {}]   ;;  %s2156_s4 = inlined_call_operand.vmem [shape: f32[16,8], index: 4, kind: output, shape index: {}]  }
   0x1 LB: > { %s1900_s16 = sadd.s32 4294967295, %s1860_s15   ;;  %p1579_p0 = scmp.ge.s32.totalorder %s1860_s15, 1  ;;  %s1860_s15 = sphi %s1894_s15, %s14_s15  }
   0x2   : > { %p163_p1 = scmp.lt.s32.totalorder %s1860_s15, 3 }
   0x4   : > { %p164_p2 = pnand %p1579_p0, %p163_p1 }
   0x5   : > { %s1580_s17 = sshll.u32 (!%p164_p2), %s1900_s16, 3  ;;  %v1862_v0 = vmov (!%p164_p2), 2   ;;  %v1863_v1 = vmov (!%p164_p2), 0   ;;  %v1864_v2 = vmov (!%p164_p2), 0.0   ;;  %v1865_v5 = vmov (!%p164_p2), 4   ;;  %v488_v12 = vld [vmem:[%s2153_s1] sm:$0xff] (!%p164_p2) }
   0x6   : > { %167 = sbr.rel (%p164_p2) target bundleno = 787 (0x313), region = 36  ;;  %1765 = vset.pattern.permute.xlu0 (!%p164_p2), %v1862_v0  ;;  %1762 = vset.pattern.permute.xlu1 (!%p164_p2), %v1863_v1  ;;  %p189_p3 = scmp.lt.s32.totalorder (!%p164_p2), %s1580_s17, 15  ;;  %v1866_v6 = vmov (!%p164_p2), 1   ;;  %v1867_v8 = vmov (!%p164_p2), 3   ;;  %v489_v13 = vld [vmem:[%s2153_s1 + $0x8] sm:$0xff] (!%p164_p2)  ;;  %vm516_vm0 = vcmask (!%p164_p2), 1044480   ;;  %v206_v26 = vlaneseq (!%p164_p2) }
   0x7   : > { %1703 = vmatprep.subr.mxu1 (!%p164_p2), %v1864_v2  ;;  %v1743_v15 = vpack.c.bf16 (!%p164_p2), %v489_v13, %v488_v12  ;;  %v490_v17 = vld [vmem:[%s2153_s1 + $0x10] sm:$0x1f] (!%p164_p2)  ;;  %vm491_vm11 = vcmask (!%p164_p2), 171008   ;;  %p194_p4 = scmp.lt.s32.totalorder (!%p164_p2), %s1900_s16, 1 }
   0x8   : > { %v1959_v29 = vand.u32 (!%p164_p2), 127, %v206_v26 }
   0x9   : > { %1744 = vmatprep.subr.bf16.mxu0 (!%p164_p2), %v1743_v15 }
   0xa   : > { %1746 = vmatpush3.bf16.msra.mxu0 (!%p164_p2), %v1743_v15 }
   0xb   : > { %1689 = vmatprep.subr.msk.mxu0 (!%p164_p2), %vm516_vm0, %v490_v17 }
   0xd   : > { %s2158_s17 = smov (!%p189_p3, %s1580_s17), 15  ;;  %s2160_s16 = smov (!%p194_p4, %s1900_s16), 1 }
   0xe   : > { %s1581_s18 = sshll.u32 %s2158_s17, 3  ;;  %1690 = vmatpush3.msk.msra.mxu0 %vm516_vm0, %v490_v17  ;;  %s1582_s6 = sshll.u32 %s2160_s16, 3 }
   0xf   : > { %s1911_s21 = scalar_lea.vmem %s2152_s0, %s1581_s18  ;;  %1728 = vmatprep.subr.mxu0 %v1864_v2  ;;  %s197_s9 = scalar_lea.vmem %s2156_s4, %s1582_s6 }
  0x10   : > { %v199_v3 = vld [vmem:[%s1911_s21 + $0x8] sm:$0xff]  ;;  %v198_v4 = vld [vmem:[%s1911_s21] sm:$0xff]  ;;  %v201_v7 = vld [vmem:[%s1911_s21 + $0x18] sm:$0xff] }
  0x11   : > { %316 = vperm.xlu0 %1765, %v199_v3   ;;  %212 = vperm.xlu1 %1762, %v199_v3   ;;  %v200_v9 = vld [vmem:[%s1911_s21 + $0x10] sm:$0xff]  ;;  %v203_v10 = vld [vmem:[%s1911_s21 + $0x28] sm:$0xff]  ;;  %v202_v11 = vld [vmem:[%s1911_s21 + $0x20] sm:$0xff] }
  0x12   : > { %v204_v14 = vld [vmem:[%s1911_s21 + $0x30] sm:$0xff]  ;;  %v205_v16 = vld [vmem:[%s1911_s21 + $0x38] sm:$0xff] }
  0x15   : > { %1767 = vset.pattern.permute.xlu0 %v1865_v5  ;;  %1763 = vset.pattern.permute.xlu1 %v1866_v6 }
  0x16   : > { %260 = vperm.xlu1 %1763, %v199_v3   ;;  %425 = vperm.xlu0 %1767, %v198_v4  }
  0x1a   : > { %1764 = vset.pattern.permute.xlu1 %v1862_v0  ;;  %1773 = vset.pattern.permute.xlu0 %v1867_v8 }
  0x1b   : > { %378 = vperm.xlu0 %1773, %v201_v7   ;;  %313 = vperm.xlu1 %1764, %v198_v4  }
  0x1f   : > { %1774 = vset.pattern.permute.xlu0 %v1866_v6  ;;  %1766 = vset.pattern.permute.xlu1 %v1867_v8 }
  0x20   : > { %257 = vperm.xlu0 %1774, %v198_v4   ;;  %369 = vperm.xlu1 %1766, %v198_v4  }
  0x24   : > { %263 = vperm.xlu0 %1774, %v200_v9   ;;  %372 = vperm.xlu1 %1766, %v199_v3  }
  0x28   : > { %272 = vperm.xlu0 %1774, %v203_v10   ;;  %1768 = vset.pattern.permute.xlu1 %v1865_v5 }
  0x29   : > { %428 = vperm.xlu1 %1768, %v199_v3  }
  0x2c   : > { %1778 = vset.pattern.permute.xlu0 %v1863_v1 }
  0x2d   : > { %209 = vperm.xlu0 %1778, %v198_v4   ;;  %1769 = vset.pattern.permute.xlu1 %v1863_v1 }
  0x2e   : > { %215 = vperm.xlu1 %1769, %v200_v9  }
  0x31   : > { %221 = vperm.xlu0 %1778, %v202_v11  }
  0x32   : > { %218 = vperm.xlu1 %1769, %v201_v7  }
  0x35   : > { %227 = vperm.xlu0 %1778, %v204_v14  }
  0x36   : > { %1770 = vset.pattern.permute.xlu1 %v1866_v6 }
  0x37   : > { %266 = vperm.xlu1 %1770, %v201_v7  }
  0x39   : > { %230 = vperm.xlu0 %1778, %v205_v16  }
  0x3b   : > { %1771 = vset.pattern.permute.xlu1 %v1862_v0 }
  0x3c   : > { %322 = vperm.xlu1 %1771, %v201_v7  }
  0x3d   : > { %1782 = vset.pattern.permute.xlu0 %v1862_v0 }
  0x3e   : > { %319 = vperm.xlu0 %1782, %v200_v9  }
  0x40   : > { %1772 = vset.pattern.permute.xlu1 %v1867_v8 }
  0x41   : > { %375 = vperm.xlu1 %1772, %v200_v9  }
  0x42   : > { %334 = vperm.xlu0 %1782, %v205_v16  }
  0x45   : > { %1775 = vset.pattern.permute.xlu1 %v1865_v5 }
  0x46   : > { %431 = vperm.xlu1 %1775, %v200_v9   ;;  %1786 = vset.pattern.permute.xlu0 %v1867_v8 }
  0x47   : > { %384 = vperm.xlu0 %1786, %v203_v10  }
  0x4a   : > { %434 = vperm.xlu1 %1775, %v201_v7  }
  0x4b   : > { %390 = vperm.xlu0 %1786, %v205_v16  }
  0x4e   : > { %1776 = vset.pattern.permute.xlu1 %v1866_v6 }
  0x4f   : > { %269 = vperm.xlu1 %1776, %v202_v11   ;;  %1789 = vset.pattern.permute.xlu0 %v1863_v1 }
  0x53   : > { %1777 = vset.pattern.permute.xlu1 %v1863_v1 }
  0x54   : > { %224 = vperm.xlu1 %1777, %v203_v10  }
  0x58   : > { %1779 = vset.pattern.permute.xlu1 %v1862_v0 }
  0x59   : > { %325 = vperm.xlu1 %1779, %v202_v11  }
  0x5d   : > { %328 = vperm.xlu1 %1779, %v203_v10  }
  0x61   : > { %1780 = vset.pattern.permute.xlu1 %v1866_v6 }
  0x62   : > { %275 = vperm.xlu1 %1780, %v204_v14  }
  0x66   : > { %1781 = vset.pattern.permute.xlu1 %v1867_v8 }
  0x67   : > { %381 = vperm.xlu1 %1781, %v202_v11  }
  0x6b   : > { %1783 = vset.pattern.permute.xlu1 %v1866_v6 }
  0x6c   : > { %278 = vperm.xlu1 %1783, %v205_v16  }
  0x70   : > { %1784 = vset.pattern.permute.xlu1 %v1862_v0 }
  0x71   : > { %331 = vperm.xlu1 %1784, %v204_v14  }
  0x75   : > { %1785 = vset.pattern.permute.xlu1 %v1865_v5 }
  0x76   : > { %437 = vperm.xlu1 %1785, %v202_v11  }
  0x7a   : > { %440 = vperm.xlu1 %1785, %v203_v10  }
  0x7e   : > { %1787 = vset.pattern.permute.xlu1 %v1867_v8 }
  0x7f   : > { %387 = vperm.xlu1 %1787, %v204_v14  }
  0x83   : > { %1788 = vset.pattern.permute.xlu1 %v1865_v5 }
  0x84   : > { %443 = vperm.xlu1 %1788, %v204_v14  }
  0x88   : > { %446 = vperm.xlu1 %1788, %v205_v16  }
  0x90   : > { %v213_v18 = vpop.permute.xlu1 %212  ;;  %v317_v19 = vpop.permute.xlu0 %316 }
  0x91   : > { %vm233_vm2 = vcmp.eq.s32.totalorder %v1959_v29, %v213_v18  ;;  %vm337_vm4 = vcmp.eq.s32.totalorder %v1959_v29, %v317_v19 }
  0x92   : > { %v1584_v33 = vsel %vm233_vm2, 1.0, %v1864_v2  ;;  %v1600_v37 = vsel %vm337_vm4, 1.0, %v1864_v2 }
  0x95   : > { %v261_v20 = vpop.permute.xlu1 %260  ;;  %v426_v21 = vpop.permute.xlu0 %425 }
  0x96   : > { %vm281_vm1 = vcmp.eq.s32.totalorder %v1959_v29, %v261_v20  ;;  %vm448_vm9 = vcmp.eq.s32.totalorder %v1959_v29, %v426_v21 }
  0x97   : > { %v1592_v32 = vsel %vm281_vm1, 1.0, %v1864_v2  ;;  %v1615_v48 = vsel %vm448_vm9, 1.0, %v1864_v2 }
  0x98   : > { %v305_v34 = vadd.f32 %v1592_v32, %v1584_v33 }
  0x9a   : > { %v314_v22 = vpop.permute.xlu1 %313  ;;  %v1957_v23 = vpop.permute.xlu0 %378  ;;  %v361_v43 = vadd.f32 %v1600_v37, %v305_v34 }
  0x9b   : > { %vm336_vm6 = vcmp.eq.s32.totalorder %v1959_v29, %v314_v22 }
  0x9c   : > { %v1599_v42 = vsel %vm336_vm6, 1.0, %v1864_v2 }
  0x9f   : > { %v370_v24 = vpop.permute.xlu1 %369  ;;  %v258_v25 = vpop.permute.xlu0 %257 }
  0xa0   : > { %vm280_vm3 = vcmp.eq.s32.totalorder %v1959_v29, %v258_v25  ;;  %vm392_vm10 = vcmp.eq.s32.totalorder %v1959_v29, %v370_v24 }
  0xa1   : > { %v1591_v35 = vsel %vm280_vm3, 1.0, %v1864_v2  ;;  %v1607_v49 = vsel %vm392_vm10, 1.0, %v1864_v2  ;;  %vm395_vm3 = vcmp.eq.s32.totalorder %v1959_v29, %v1957_v23 }
  0xa2   : > { %v1610_v12 = vsel %vm395_vm3, 1.0, %v1864_v2 }
  0xa3   : > { %v373_v27 = vpop.permute.xlu1 %372  ;;  %v264_v28 = vpop.permute.xlu0 %263 }
  0xa4   : > { %vm393_vm5 = vcmp.eq.s32.totalorder %v1959_v29, %v373_v27  ;;  %vm282_vm12 = vcmp.eq.s32.totalorder %v1959_v29, %v264_v28 }
  0xa5   : > { %v1608_v40 = vsel %vm393_vm5, 1.0, %v1864_v2  ;;  %v1593_v60 = vsel %vm282_vm12, 1.0, %v1864_v2 }
  0xa6   : > { %v417_v50 = vadd.f32 %v1608_v40, %v361_v43 }
  0xa7   : > { %v1962_v30 = vpop.permute.xlu0 %272 }
  0xa8   : > { %v429_v31 = vpop.permute.xlu1 %428 }
  0xa9   : > { %vm449_vm8 = vcmp.eq.s32.totalorder %v1959_v29, %v429_v31 }
  0xaa   : > { %v1616_v45 = vsel %vm449_vm8, 1.0, %v1864_v2  ;;  %vm285_vm8 = vcmp.eq.s32.totalorder %v1959_v29, %v1962_v30 }
  0xab   : > { %v473_v52 = vadd.f32 %v1616_v45, %v417_v50  ;;  %v1596_v33 = vsel %vm285_vm8, 1.0, %v1864_v2 }
  0xac   : > { %v210_v36 = vpop.permute.xlu0 %209 }
  0xad   : > { %vm232_vm7 = vcmp.eq.s32.totalorder %v1959_v29, %v210_v36  ;;  %v216_v38 = vpop.permute.xlu1 %215  ;;  %v481_v57 = vmul.f32 0.2, %v473_v52 }
  0xae   : > { %v1583_v39 = vsel %vm232_vm7, 1.0, %v1864_v2  ;;  %vm234_vm13 = vcmp.eq.s32.totalorder %v1959_v29, %v216_v38 }
  0xaf   : > { %v304_v41 = vadd.f32 %v1591_v35, %v1583_v39  ;;  %v1585_v61 = vsel %vm234_vm13, 1.0, %v1864_v2 }
  0xb0   : > { %v1980_v44 = vpop.permute.xlu0 %221  ;;  %v306_v0 = vadd.f32 %v1593_v60, %v1585_v61 }
  0xb1   : > { %v360_v46 = vadd.f32 %v1599_v42, %v304_v41  ;;  %v219_v47 = vpop.permute.xlu1 %218  ;;  %vm236_vm6 = vcmp.eq.s32.totalorder %v1959_v29, %v1980_v44 }
  0xb2   : > { %vm235_vm0 = vcmp.eq.s32.totalorder %v1959_v29, %v219_v47  ;;  %v1587_v31 = vsel %vm236_vm6, 1.0, %v1864_v2 }
  0xb3   : > { %v416_v51 = vadd.f32 %v1607_v49, %v360_v46  ;;  %v1586_v5 = vsel %vm235_vm0, 1.0, %v1864_v2 }
  0xb4   : > { %v1985_v53 = vpop.permute.xlu0 %227 }
  0xb5   : > { %v472_v54 = vadd.f32 %v1615_v48, %v416_v51  ;;  %vm238_vm0 = vcmp.eq.s32.totalorder %v1959_v29, %v1985_v53 }
  0xb6   : > { %v267_v55 = vpop.permute.xlu1 %266  ;;  %v1589_v53 = vsel %vm238_vm0, 1.0, %v1864_v2  ;;  %vm1510_vm0 = vcmask 1043459  }
  0xb7   : > { %v480_v56 = vmul.f32 0.2, %v472_v54  ;;  %vm283_vm14 = vcmp.eq.s32.totalorder %v1959_v29, %v267_v55 }
  0xb8   : > { %v1987_v58 = vpop.permute.xlu0 %230  ;;  %v1594_v3 = vsel %vm283_vm14, 1.0, %v1864_v2 }
  0xb9   : > { %1691 = vmatprep.mubr.msk.f32.mxu0 %vm491_vm11, %v480_v56  ;;  %v307_v8 = vadd.f32 %v1594_v3, %v1586_v5 }
  0xba   : > { %1692 = vmatmul.mubr.msk.f32.vlgmr.msra.gmra.mrb[0].mxu0 %vm491_vm11, %v481_v57 }
  0xbb   : > { %v323_v59 = vpop.permute.xlu1 %322 }
  0xbc   : > { %vm339_vm1 = vcmp.eq.s32.totalorder %v1959_v29, %v323_v59 }
  0xbd   : > { %v320_v62 = vpop.permute.xlu0 %319  ;;  %v1602_v6 = vsel %vm339_vm1, 1.0, %v1864_v2 }
  0xbe   : > { %vm338_vm15 = vcmp.eq.s32.totalorder %v1959_v29, %v320_v62  ;;  %v363_v10 = vadd.f32 %v1602_v6, %v307_v8 }
  0xbf   : > { %v1601_v63 = vsel %vm338_vm15, 1.0, %v1864_v2 }
  0xc0   : > { %v376_v1 = vpop.permute.xlu1 %375  ;;  %v362_v4 = vadd.f32 %v1601_v63, %v306_v0  ;;  %v419_v17 = vadd.f32 %v1610_v12, %v363_v10 }
  0xc1   : > { %vm394_vm2 = vcmp.eq.s32.totalorder %v1959_v29, %v376_v1  ;;  %v335_v27 = vpop.permute.xlu0 %334 }
  0xc2   : > { %v1609_v7 = vsel %vm394_vm2, 1.0, %v1864_v2  ;;  %vm343_vm6 = vcmp.eq.s32.totalorder %v1959_v29, %v335_v27 }
  0xc3   : > { %v418_v11 = vadd.f32 %v1609_v7, %v362_v4  ;;  %v1606_v63 = vsel %vm343_vm6, 1.0, %v1864_v2 }
  0xc5   : > { %v432_v9 = vpop.permute.xlu1 %431 }
  0xc6   : > { %vm450_vm4 = vcmp.eq.s32.totalorder %v1959_v29, %v432_v9  ;;  %v385_v35 = vpop.permute.xlu0 %384 }
  0xc7   : > { %v1617_v13 = vsel %vm450_vm4, 1.0, %v1864_v2  ;;  %vm397_vm14 = vcmp.eq.s32.totalorder %v1959_v29, %v385_v35  ;;  %vm239_vm4 = vcmp.eq.s32.totalorder %v1959_v29, %v1987_v58 }
  0xc8   : > { %v474_v14 = vadd.f32 %v1617_v13, %v418_v11  ;;  %v1612_v44 = vsel %vm397_vm14, 1.0, %v1864_v2  ;;  %v1590_v59 = vsel %vm239_vm4, 1.0, %v1864_v2  ;;  %vm1506_vm14 = vcmask 1041409  }
  0xc9   : > { %v435_v15 = vpop.permute.xlu1 %434  ;;  %vm1518_vm4 = vcmask 1047559  }
  0xca   : > { %v482_v16 = vmul.f32 0.2, %v474_v14  ;;  %vm451_vm5 = vcmp.eq.s32.totalorder %v1959_v29, %v435_v15  ;;  %v391_v60 = vpop.permute.xlu0 %390  ;;  %v1308_v15 = vld [vmem:[%s2155_s3] sm:$0xff] }
  0xcb   : > { %v1618_v18 = vsel %vm451_vm5, 1.0, %v1864_v2  ;;  %vm399_vm8 = vcmp.eq.s32.totalorder %v1959_v29, %v391_v60  ;;  %1311 = vperm.xlu0 %1789, %v1308_v15  }
  0xcc   : > { %v475_v19 = vadd.f32 %v1618_v18, %v419_v17  ;;  %1694 = vmatprep.mubr.msk.f32.mxu0 %vm491_vm11, %v482_v16  ;;  %v1614_v6 = vsel %vm399_vm8, 1.0, %v1864_v2 }
  0xce   : > { %v483_v20 = vmul.f32 0.2, %v475_v19  ;;  %v270_v21 = vpop.permute.xlu1 %269 }
  0xcf   : > { %vm284_vm7 = vcmp.eq.s32.totalorder %v1959_v29, %v270_v21 }
  0xd0   : > { %1695 = vmatmul.mubr.msk.f32.gmra.mrb[2].mxu0 %vm491_vm11, %v483_v20  ;;  %v1595_v32 = vsel %vm284_vm7, 1.0, %v1864_v2 }
  0xd1   : > { %v308_v37 = vadd.f32 %v1595_v32, %v1587_v31 }
  0xd3   : > { %v225_v22 = vpop.permute.xlu1 %224 }
  0xd4   : > { %vm237_vm9 = vcmp.eq.s32.totalorder %v1959_v29, %v225_v22 }
  0xd5   : > { %v1588_v34 = vsel %vm237_vm9, 1.0, %v1864_v2 }
  0xd6   : > { %v309_v39 = vadd.f32 %v1596_v33, %v1588_v34 }
  0xd8   : > { %v326_v23 = vpop.permute.xlu1 %325 }
  0xd9   : > { %vm340_vm10 = vcmp.eq.s32.totalorder %v1959_v29, %v326_v23 }
  0xda   : > { %v1603_v30 = vsel %vm340_vm10, 1.0, %v1864_v2 }
  0xdb   : > { %v364_v41 = vadd.f32 %v1603_v30, %v308_v37 }
  0xdc   : > { %v329_v24 = vpop.permute.xlu1 %328 }
  0xdd   : > { %vm341_vm12 = vcmp.eq.s32.totalorder %v1959_v29, %v329_v24 }
  0xde   : > { %v1604_v38 = vsel %vm341_vm12, 1.0, %v1864_v2  ;;  %vm1868_vm12 = vmmov 0  }
  0xdf   : > { %v365_v42 = vadd.f32 %v1604_v38, %v309_v39  ;;  %1705 = vmatprep.mubr.msk.f32.mxu1 %vm1868_vm12, %v1864_v2 }
  0xe1   : > { %v276_v25 = vpop.permute.xlu1 %275  ;;  %v421_v48 = vadd.f32 %v1612_v44, %v365_v42 }
  0xe2   : > { %vm286_vm1 = vcmp.eq.s32.totalorder %v1959_v29, %v276_v25 }
  0xe3   : > { %v1597_v54 = vsel %vm286_vm1, 1.0, %v1864_v2  ;;  %vm1512_vm1 = vcmask 1044484  }
  0xe4   : > { %v310_v61 = vadd.f32 %v1597_v54, %v1589_v53 }
  0xe6   : > { %v382_v26 = vpop.permute.xlu1 %381 }
  0xe7   : > { %vm396_vm13 = vcmp.eq.s32.totalorder %v1959_v29, %v382_v26 }
  0xe8   : > { %v1611_v40 = vsel %vm396_vm13, 1.0, %v1864_v2  ;;  %vm634_vm13 = vcmask 130048  }
  0xe9   : > { %v420_v45 = vadd.f32 %v1611_v40, %v364_v41 }
  0xeb   : > { %v279_v28 = vpop.permute.xlu1 %278 }
  0xec   : > { %vm287_vm2 = vcmp.eq.s32.totalorder %v1959_v29, %v279_v28 }
  0xed   : > { %v1598_v55 = vsel %vm287_vm2, 1.0, %v1864_v2  ;;  %vm1514_vm2 = vcmask 1045509  }
  0xee   : > { %v311_v62 = vadd.f32 %v1598_v55, %v1590_v59 }
  0xf0   : > { %v332_v36 = vpop.permute.xlu1 %331  ;;  %v367_v4 = vadd.f32 %v1606_v63, %v311_v62 }
  0xf1   : > { %vm342_vm5 = vcmp.eq.s32.totalorder %v1959_v29, %v332_v36 }
  0xf2   : > { %v1605_v58 = vsel %vm342_vm5, 1.0, %v1864_v2  ;;  %v423_v10 = vadd.f32 %v1614_v6, %v367_v4 }
  0xf3   : > { %v366_v1 = vadd.f32 %v1605_v58, %v310_v61 }
  0xf5   : > { %v438_v43 = vpop.permute.xlu1 %437 }
  0xf6   : > { %vm452_vm15 = vcmp.eq.s32.totalorder %v1959_v29, %v438_v43 }
  0xf7   : > { %v1619_v46 = vsel %vm452_vm15, 1.0, %v1864_v2  ;;  %vm1508_vm15 = vcmask 1042434  }
  0xf8   : > { %v476_v47 = vadd.f32 %v1619_v46, %v420_v45 }
  0xf9   : > { %v441_v49 = vpop.permute.xlu1 %440 }
  0xfa   : > { %v484_v50 = vmul.f32 0.2, %v476_v47  ;;  %vm453_vm3 = vcmp.eq.s32.totalorder %v1959_v29, %v441_v49 }
  0xfb   : > { %v1620_v51 = vsel %vm453_vm3, 1.0, %v1864_v2  ;;  %vm1516_vm3 = vcmask 1046534  }
  0xfc   : > { %v477_v52 = vadd.f32 %v1620_v51, %v421_v48  ;;  %1697 = vmatprep.mubr.msk.f32.mxu0 %vm491_vm11, %v484_v50 }
  0xfe   : > { %v485_v56 = vmul.f32 0.2, %v477_v52  ;;  %v388_v57 = vpop.permute.xlu1 %387 }
  0xff   : > { %vm398_vm7 = vcmp.eq.s32.totalorder %v1959_v29, %v388_v57 }
 0x100   : > { %1698 = vmatmul.mubr.msk.f32.gmra.mrb[4].mxu0 %vm491_vm11, %v485_v56  ;;  %v1613_v0 = vsel %vm398_vm7, 1.0, %v1864_v2 }
 0x101   : > { %v422_v5 = vadd.f32 %v1613_v0, %v366_v1 }
 0x103   : > { %v444_v3 = vpop.permute.xlu1 %443 }
 0x104   : > { %vm454_vm9 = vcmp.eq.s32.totalorder %v1959_v29, %v444_v3 }
 0x105   : > { %v1621_v7 = vsel %vm454_vm9, 1.0, %v1864_v2 }
 0x106   : > { %v478_v8 = vadd.f32 %v1621_v7, %v422_v5 }
 0x107   : > { %v447_v9 = vpop.permute.xlu1 %446 }
 0x108   : > { %v486_v11 = vmul.f32 0.2, %v478_v8  ;;  %vm455_vm10 = vcmp.eq.s32.totalorder %v1959_v29, %v447_v9  ;;  %v625_v29 = vld [vmem:[%s2154_s2] sm:$0xff] }
 0x109   : > { %v1622_v12 = vsel %vm455_vm10, 1.0, %v1864_v2 }
 0x10a   : > { %v479_v13 = vadd.f32 %v1622_v12, %v423_v10  ;;  %1700 = vmatprep.mubr.msk.f32.mxu0 %vm491_vm11, %v486_v11 }
 0x10c   : > { %v487_v14 = vmul.f32 0.2, %v479_v13 }
 0x10e   : > { %1701 = vmatmul.mubr.msk.f32.gmra.mrb[6].mxu0 %vm491_vm11, %v487_v14  ;;  %vm1227_vm11 = vcmask 64512  }
 0x10f   : > { %1730 = vmatprep.mubr.msk.f32.mxu0 %vm1868_vm12, %v1864_v2 }
 0x14a   : > { %v2109_v1 = vpop.permute.xlu0 %1311 }
 0x18d   : > { %v1693_v16 = vpop.f32.mrb[0].mxu0 }
 0x18e   : > { %v586_v17 = vpop.f32.mrb[1].mxu0  ;;  %v627_v19 = vadd.f32 %v1693_v16, %v625_v29 }
 0x18f   : > { %v626_v18 = vadd.f32 %v625_v29, %v586_v17 }
 0x191   : > { %1704 = vmatpush3.xpose.msk.msra.mxu1 %vm634_vm13, %v626_v18 }
 0x192   : > { %1708 = vmatprep.subr.mxu1 %v1864_v2 }
 0x194   : > { %1706 = vmatmul.mubr.msk.f32.vlgmr.msra.gmra.mrb[0].mxu1 %vm634_vm13, %v626_v18 }
 0x195   : > { %1709 = vmatpush3.xpose.msk.msra.mxu1 %vm634_vm13, %v627_v19  ;;  %1710 = vmatprep.mubr.msk.f32.mxu1 %vm1868_vm12, %v1864_v2 }
 0x196   : > { %1713 = vmatprep.subr.mxu1 %v1864_v2 }
 0x198   : > { %1711 = vmatmul.mubr.msk.f32.vlgmr.msra.gmra.mrb[2].mxu1 %vm634_vm13, %v627_v19 }
 0x199   : > { %1715 = vmatprep.mubr.msk.f32.mxu1 %vm1868_vm12, %v1864_v2 }
 0x1a3   : > { %v1696_v20 = vpop.f32.mrb[2].mxu0 }
 0x1a4   : > { %v596_v21 = vpop.f32.mrb[3].mxu0  ;;  %v629_v23 = vadd.f32 %v1696_v20, %v625_v29 }
 0x1a5   : > { %v628_v22 = vadd.f32 %v625_v29, %v596_v21 }
 0x1a7   : > { %1714 = vmatpush3.xpose.msk.msra.mxu1 %vm634_vm13, %v628_v22 }
 0x1a8   : > { %1718 = vmatprep.subr.mxu1 %v1864_v2 }
 0x1aa   : > { %1716 = vmatmul.mubr.msk.f32.vlgmr.msra.gmra.mrb[4].mxu1 %vm634_vm13, %v628_v22 }
 0x1ab   : > { %1719 = vmatpush3.xpose.msk.msra.mxu1 %vm634_vm13, %v629_v23  ;;  %1720 = vmatprep.mubr.msk.f32.mxu1 %vm1868_vm12, %v1864_v2 }
 0x1ac   : > { %1723 = vmatprep.subr.mxu1 %v1864_v2 }
 0x1ae   : > { %1721 = vmatmul.mubr.msk.f32.vlgmr.msra.gmra.mrb[6].mxu1 %vm634_vm13, %v629_v23 }
 0x1af   : > { %1725 = vmatprep.mubr.msk.f32.mxu1 %vm1868_vm12, %v1864_v2 }
 0x1d3   : > { %v1699_v24 = vpop.f32.mrb[4].mxu0 }
 0x1d4   : > { %v631_v25 = vadd.f32 %v1699_v24, %v625_v29  ;;  %v606_v26 = vpop.f32.mrb[5].mxu0 }
 0x1d5   : > { %v630_v27 = vadd.f32 %v625_v29, %v606_v26 }
 0x1d6   : > { %1729 = vmatpush3.xpose.msk.msra.mxu0 %vm634_vm13, %v631_v25 }
 0x1d7   : > { %1724 = vmatpush3.xpose.msk.msra.mxu1 %vm634_vm13, %v630_v27  ;;  %1738 = vmatprep.subr.mxu0 %v1864_v2 }
 0x1d8   : > { %1733 = vmatprep.subr.mxu1 %v1864_v2 }
 0x1d9   : > { %1731 = vmatmul.mubr.msk.f32.vlgmr.msra.gmra.mrb[8].mxu0 %vm634_vm13, %v631_v25 }
 0x1da   : > { %1726 = vmatmul.mubr.msk.f32.vlgmr.msra.gmra.mrb[8].mxu1 %vm634_vm13, %v630_v27  ;;  %1740 = vmatprep.mubr.msk.f32.mxu0 %vm1868_vm12, %v1864_v2 }
 0x1db   : > { %1735 = vmatprep.mubr.msk.f32.mxu1 %vm1868_vm12, %v1864_v2 }
 0x1e1   : > { %v1702_v28 = vpop.f32.mrb[6].mxu0 }
 0x1e2   : > { %v633_v31 = vadd.f32 %v1702_v28, %v625_v29  ;;  %v616_v32 = vpop.f32.mrb[7].mxu0 }
 0x1e3   : > { %v632_v33 = vadd.f32 %v625_v29, %v616_v32 }
 0x1e4   : > { %1739 = vmatpush3.xpose.msk.msra.mxu0 %vm634_vm13, %v633_v31 }
 0x1e5   : > { %1734 = vmatpush3.xpose.msk.msra.mxu1 %vm634_vm13, %v632_v33 }
 0x1e7   : > { %1741 = vmatmul.mubr.msk.f32.vlgmr.msra.gmra.mrb[10].mxu0 %vm634_vm13, %v633_v31 }
 0x1e8   : > { %1736 = vmatmul.mubr.msk.f32.vlgmr.msra.gmra.mrb[10].mxu1 %vm634_vm13, %v632_v33 }
 0x267   : > { %v704_v34 = vpop.f32.mrb[0].mxu1 }
 0x268   : > { %v1219_v35 = vmul.f32 0.25, %v704_v34  ;;  %v1707_v36 = vpop.f32.mrb[1].mxu1 }
 0x26a   : > { %v1228_v30 = vsel %vm1227_vm11, %v1219_v35, -inf }
 0x26b   : > { %v1229_v37 = vrot.slane %v1228_v30, 4  ;;  %v777_v2 = vpop.f32.mrb[2].mxu1 }
 0x26c   : > { %v1220_v38 = vmul.f32 0.25, %v777_v2  ;;  %v1712_v39 = vpop.f32.mrb[3].mxu1 }
 0x26d   : > { %v1230_v40 = vmax.f32 %v1228_v30, %v1229_v37 }
 0x26e   : > { %v1235_v41 = vsel %vm1227_vm11, %v1220_v38, -inf }
 0x26f   : > { %v1231_v42 = vrot.slane %v1230_v40, 2  ;;  %v1236_v43 = vrot.slane %v1235_v41, 4 }
 0x271   : > { %v1232_v44 = vmax.f32 %v1230_v40, %v1231_v42  ;;  %v1237_v45 = vmax.f32 %v1235_v41, %v1236_v43 }
 0x273   : > { %v1233_v46 = vrot.slane %v1232_v44, 1  ;;  %v1238_v47 = vrot.slane %v1237_v45, 2 }
 0x275   : > { %v1234_v48 = vmax.f32 %v1232_v44, %v1233_v46  ;;  %v1239_v49 = vmax.f32 %v1237_v45, %v1238_v47 }
 0x277   : > { %v1284_v50 = vsub.f32 %v1219_v35, %v1234_v48  ;;  %v1240_v51 = vrot.slane %v1239_v49, 1 }
 0x279   : > { %v1292_v52 = vmul.f32 1.442695, %v1284_v50  ;;  %v1241_v53 = vmax.f32 %v1239_v49, %v1240_v51 }
 0x27b   : > { %1790 = vpow2.f32 %v1292_v52  ;;  %v1285_v54 = vsub.f32 %v1220_v38, %v1241_v53 }
 0x27d   : > { %v1294_v55 = vmul.f32 1.442695, %v1285_v54  ;;  %v850_v56 = vpop.f32.mrb[4].mxu1 }
 0x27e   : > { %v1221_v57 = vmul.f32 0.25, %v850_v56  ;;  %v1717_v59 = vpop.f32.mrb[5].mxu1 }
 0x27f   : > { %1792 = vpow2.f32 %v1294_v55 }
 0x280   : > { %v1242_v60 = vsel %vm1227_vm11, %v1221_v57, -inf }
 0x281   : > { %v1243_v58 = vrot.slane %v1242_v60, 4  ;;  %v923_v61 = vpop.f32.mrb[6].mxu1 }
 0x282   : > { %v1222_v62 = vmul.f32 0.25, %v923_v61  ;;  %v1722_v63 = vpop.f32.mrb[7].mxu1 }
 0x283   : > { %v1244_v0 = vmax.f32 %v1242_v60, %v1243_v58 }
 0x284   : > { %v1249_v3 = vsel %vm1227_vm11, %v1222_v62, -inf }
 0x285   : > { %v1791_v4 = vpop.eup %1790  ;;  %v1245_v5 = vrot.slane %v1244_v0, 2  ;;  %v1250_v6 = vrot.slane %v1249_v3, 4 }
 0x286   : > { %v1378_v7 = vsel %vm1227_vm11, %v1791_v4, 0.0  ;;  %v1314_v8 = vmul.f32 %v1791_v4, %v2109_v1 }
 0x287   : > { %v1379_v9 = vrot.slane %v1378_v7, 4  ;;  %v1246_v10 = vmax.f32 %v1244_v0, %v1245_v5  ;;  %v1251_v11 = vmax.f32 %v1249_v3, %v1250_v6 }
 0x288   : > { %v1322_v12 = vsel %vm1227_vm11, %v1314_v8, 0.0 }
 0x289   : > { %v1793_v13 = vpop.eup %1792  ;;  %v1380_v14 = vadd.f32 %v1379_v9, %v1378_v7  ;;  %v1247_v15 = vrot.slane %v1246_v10, 1  ;;  %v1252_v29 = vrot.slane %v1251_v11, 2  ;;  %v1323_v16 = vrot.slane %v1322_v12, 4 }
 0x28a   : > { %v1385_v17 = vsel %vm1227_vm11, %v1793_v13, 0.0  ;;  %v1315_v18 = vmul.f32 %v1793_v13, %v2109_v1 }
 0x28b   : > { %v1381_v19 = vrot.slane %v1380_v14, 2  ;;  %v1386_v20 = vrot.slane %v1385_v17, 4  ;;  %v1248_v21 = vmax.f32 %v1246_v10, %v1247_v15  ;;  %v1253_v22 = vmax.f32 %v1251_v11, %v1252_v29 }
 0x28c   : > { %v1324_v23 = vadd.f32 %v1323_v16, %v1322_v12  ;;  %v1329_v24 = vsel %vm1227_vm11, %v1315_v18, 0.0 }
 0x28d   : > { %v1382_v25 = vadd.f32 %v1381_v19, %v1380_v14  ;;  %v1387_v26 = vadd.f32 %v1386_v20, %v1385_v17  ;;  %v1286_v27 = vsub.f32 %v1221_v57, %v1248_v21  ;;  %v1254_v28 = vrot.slane %v1253_v22, 1 }
 0x28e   : > { %v1330_v31 = vrot.slane %v1329_v24, 4  ;;  %v1325_v36 = vrot.slane %v1324_v23, 2 }
 0x28f   : > { %v1383_v32 = vrot.slane %v1382_v25, 1  ;;  %v1388_v33 = vrot.slane %v1387_v26, 2  ;;  %v1296_v34 = vmul.f32 1.442695, %v1286_v27  ;;  %v1255_v35 = vmax.f32 %v1253_v22, %v1254_v28 }
 0x290   : > { %v1331_v30 = vadd.f32 %v1330_v31, %v1329_v24  ;;  %v1326_v41 = vadd.f32 %v1325_v36, %v1324_v23 }
 0x291   : > { %v1384_v37 = vadd.f32 %v1383_v32, %v1382_v25  ;;  %v1389_v2 = vadd.f32 %v1388_v33, %v1387_v26  ;;  %1794 = vpow2.f32 %v1296_v34  ;;  %v1287_v38 = vsub.f32 %v1222_v62, %v1255_v35 }
 0x292   : > { %v1332_v42 = vrot.slane %v1331_v30, 2  ;;  %v1327_v44 = vrot.slane %v1326_v41, 1 }
 0x293   : > { %1796 = vrcp.f32 %v1384_v37  ;;  %v1390_v39 = vrot.slane %v1389_v2, 1  ;;  %v1298_v40 = vmul.f32 1.442695, %v1287_v38 }
 0x294   : > { %v1333_v45 = vadd.f32 %v1332_v42, %v1331_v30  ;;  %v1328_v49 = vadd.f32 %v1327_v44, %v1326_v41 }
 0x295   : > { %v1391_v43 = vadd.f32 %v1390_v39, %v1389_v2  ;;  %1798 = vpow2.f32 %v1298_v40 }
 0x296   : > { %v1334_v50 = vrot.slane %v1333_v45, 1 }
 0x297   : > { %1800 = vrcp.f32 %v1391_v43 }
 0x298   : > { %v1335_v58 = vadd.f32 %v1334_v50, %v1333_v45 }
 0x29b   : > { %v1795_v46 = vpop.eup %1794 }
 0x29c   : > { %v1392_v47 = vsel %vm1227_vm11, %v1795_v46, 0.0  ;;  %v1316_v48 = vmul.f32 %v1795_v46, %v2109_v1 }
 0x29d   : > { %v1797_v51 = vpop.eup %1796  ;;  %v1393_v52 = vrot.slane %v1392_v47, 4 }
 0x29e   : > { %v1336_v53 = vsel %vm1227_vm11, %v1316_v48, 0.0  ;;  %v1442_v54 = vmul.f32 %v1797_v51, %v1328_v49 }
 0x29f   : > { %v1799_v55 = vpop.eup %1798  ;;  %v1394_v56 = vadd.f32 %v1393_v52, %v1392_v47  ;;  %v1337_v57 = vrot.slane %v1336_v53, 4 }
 0x2a0   : > { %v1399_v59 = vsel %vm1227_vm11, %v1799_v55, 0.0  ;;  %v1317_v60 = vmul.f32 %v1799_v55, %v2109_v1  ;;  %v1648_v61 = vmul.f32 -1.442695, %v1442_v54 }
 0x2a1   : > { %v1801_v62 = vpop.eup %1800  ;;  %v1395_v63 = vrot.slane %v1394_v56, 2  ;;  %v1400_v0 = vrot.slane %v1399_v59, 4  ;;  %v1338_v3 = vadd.f32 %v1337_v57, %v1336_v53 }
 0x2a2   : > { %v1343_v4 = vsel %vm1227_vm11, %v1317_v60, 0.0  ;;  %v1443_v5 = vmul.f32 %v1801_v62, %v1335_v58  ;;  %1802 = vpow2.f32 %v1648_v61 }
 0x2a3   : > { %v1396_v6 = vadd.f32 %v1395_v63, %v1394_v56  ;;  %v1401_v7 = vadd.f32 %v1400_v0, %v1399_v59  ;;  %v1344_v8 = vrot.slane %v1343_v4, 4  ;;  %v1339_v12 = vrot.slane %v1338_v3, 2 }
 0x2a4   : > { %v1649_v9 = vmul.f32 -1.442695, %v1443_v5 }
 0x2a5   : > { %v1397_v10 = vrot.slane %v1396_v6, 1  ;;  %v1402_v11 = vrot.slane %v1401_v7, 2  ;;  %v1345_v13 = vadd.f32 %v1344_v8, %v1343_v4  ;;  %v1340_v16 = vadd.f32 %v1339_v12, %v1338_v3 }
 0x2a6   : > { %1804 = vpow2.f32 %v1649_v9 }
 0x2a7   : > { %v1398_v14 = vadd.f32 %v1397_v10, %v1396_v6  ;;  %v1403_v15 = vadd.f32 %v1402_v11, %v1401_v7  ;;  %v1346_v17 = vrot.slane %v1345_v13, 2  ;;  %v1341_v24 = vrot.slane %v1340_v16, 1 }
 0x2a9   : > { %1806 = vrcp.f32 %v1398_v14  ;;  %v1404_v29 = vrot.slane %v1403_v15, 1  ;;  %v1347_v25 = vadd.f32 %v1346_v17, %v1345_v13  ;;  %v1342_v30 = vadd.f32 %v1341_v24, %v1340_v16 }
 0x2ab   : > { %v1405_v18 = vadd.f32 %v1404_v29, %v1403_v15  ;;  %v1348_v37 = vrot.slane %v1347_v25, 1 }
 0x2ac   : > { %v1803_v19 = vpop.eup %1802  ;;  %v1069_v20 = vpop.f32.mrb[8].mxu0 }
 0x2ad   : > { %1808 = vrcp.f32 %v1405_v18  ;;  %v1224_v21 = vmul.f32 0.25, %v1069_v20  ;;  %v996_v22 = vpop.f32.mrb[8].mxu1  ;;  %v1732_v23 = vpop.f32.mrb[9].mxu0  ;;  %v1474_v26 = vadd.f32 1.0, %v1803_v19  ;;  %v1349_v43 = vadd.f32 %v1348_v37, %v1347_v25 }
 0x2ae   : > { %v1223_v27 = vmul.f32 0.25, %v996_v22  ;;  %v1727_v28 = vpop.f32.mrb[9].mxu1 }
 0x2af   : > { %v1263_v31 = vsel %vm1227_vm11, %v1224_v21, -inf  ;;  %1810 = vrcp.f32 %v1474_v26 }
 0x2b0   : > { %v1805_v32 = vpop.eup %1804  ;;  %v1264_v33 = vrot.slane %v1263_v31, 4  ;;  %v1256_v34 = vsel %vm1227_vm11, %v1223_v27, -inf }
 0x2b1   : > { %v1475_v35 = vadd.f32 1.0, %v1805_v32  ;;  %v1257_v36 = vrot.slane %v1256_v34, 4 }
 0x2b2   : > { %v1265_v2 = vmax.f32 %v1263_v31, %v1264_v33 }
 0x2b3   : > { %v1807_v38 = vpop.eup %1806  ;;  %1812 = vrcp.f32 %v1475_v35  ;;  %v1258_v39 = vmax.f32 %v1256_v34, %v1257_v36 }
 0x2b4   : > { %v1444_v40 = vmul.f32 %v1807_v38, %v1342_v30  ;;  %v1266_v41 = vrot.slane %v1265_v2, 2 }
 0x2b5   : > { %v1259_v42 = vrot.slane %v1258_v39, 2 }
 0x2b6   : > { %v1650_v44 = vmul.f32 -1.442695, %v1444_v40  ;;  %v1267_v45 = vmax.f32 %v1265_v2, %v1266_v41 }
 0x2b7   : > { %v1809_v46 = vpop.eup %1808  ;;  %v1260_v47 = vmax.f32 %v1258_v39, %v1259_v42 }
 0x2b8   : > { %v1445_v48 = vmul.f32 %v1809_v46, %v1349_v43  ;;  %1814 = vpow2.f32 %v1650_v44  ;;  %v1268_v49 = vrot.slane %v1267_v45, 1 }
 0x2b9   : > { %v1261_v50 = vrot.slane %v1260_v47, 1  ;;  %v1811_v59 = vpop.eup %1810 }
 0x2ba   : > { %v1651_v51 = vmul.f32 -1.442695, %v1445_v48  ;;  %v1269_v52 = vmax.f32 %v1267_v45, %v1268_v49  ;;  %v1215_v53 = vpop.f32.mrb[10].mxu0 }
 0x2bb   : > { %v1262_v54 = vmax.f32 %v1260_v47, %v1261_v50  ;;  %v1226_v55 = vmul.f32 0.25, %v1215_v53  ;;  %v1142_v56 = vpop.f32.mrb[10].mxu1  ;;  %v1742_v57 = vpop.f32.mrb[11].mxu0 }
 0x2bc   : > { %1816 = vpow2.f32 %v1651_v51  ;;  %v1289_v60 = vsub.f32 %v1224_v21, %v1269_v52  ;;  %v1225_v58 = vmul.f32 0.25, %v1142_v56  ;;  %v1737_v61 = vpop.f32.mrb[11].mxu1 }
 0x2bd   : > { %v1813_v62 = vpop.eup %1812  ;;  %v1288_v63 = vsub.f32 %v1223_v27, %v1262_v54  ;;  %v1277_v0 = vsel %vm1227_vm11, %v1226_v55, -inf }
 0x2be   : > { %v1507_v3 = vsel %vm1506_vm14, %v1813_v62, %v1811_v59  ;;  %v1302_v4 = vmul.f32 1.442695, %v1289_v60  ;;  %v1278_v5 = vrot.slane %v1277_v0, 4  ;;  %v1270_v6 = vsel %vm1227_vm11, %v1225_v58, -inf }
 0x2bf   : > { %v1300_v7 = vmul.f32 1.442695, %v1288_v63  ;;  %v1271_v8 = vrot.slane %v1270_v6, 4 }
 0x2c0   : > { %1818 = vpow2.f32 %v1302_v4  ;;  %v1279_v9 = vmax.f32 %v1277_v0, %v1278_v5 }
 0x2c1   : > { %1820 = vpow2.f32 %v1300_v7  ;;  %v1272_v10 = vmax.f32 %v1270_v6, %v1271_v8 }
 0x2c2   : > { %v1815_v11 = vpop.eup %1814  ;;  %v1280_v12 = vrot.slane %v1279_v9, 2 }
 0x2c3   : > { %v1476_v13 = vadd.f32 1.0, %v1815_v11  ;;  %v1273_v14 = vrot.slane %v1272_v10, 2 }
 0x2c4   : > { %v1281_v15 = vmax.f32 %v1279_v9, %v1280_v12 }
 0x2c5   : > { %1822 = vrcp.f32 %v1476_v13  ;;  %v1274_v29 = vmax.f32 %v1272_v10, %v1273_v14 }
 0x2c6   : > { %v1817_v16 = vpop.eup %1816  ;;  %v1282_v17 = vrot.slane %v1281_v15, 1 }
 0x2c7   : > { %v1477_v18 = vadd.f32 1.0, %v1817_v16  ;;  %v1275_v19 = vrot.slane %v1274_v29, 1 }
 0x2c8   : > { %v1283_v20 = vmax.f32 %v1281_v15, %v1282_v17 }
 0x2c9   : > { %1824 = vrcp.f32 %v1477_v18  ;;  %v1276_v21 = vmax.f32 %v1274_v29, %v1275_v19 }
 0x2ca   : > { %v1819_v22 = vpop.eup %1818  ;;  %v1291_v23 = vsub.f32 %v1226_v55, %v1283_v20 }
 0x2cb   : > { %v1821_v24 = vpop.eup %1820  ;;  %v1319_v25 = vmul.f32 %v1819_v22, %v2109_v1  ;;  %v1413_v26 = vsel %vm1227_vm11, %v1819_v22, 0.0  ;;  %v1290_v27 = vsub.f32 %v1225_v58, %v1276_v21 }
 0x2cc   : > { %v1414_v28 = vrot.slane %v1413_v26, 4  ;;  %v1318_v31 = vmul.f32 %v1821_v24, %v2109_v1  ;;  %v1406_v32 = vsel %vm1227_vm11, %v1821_v24, 0.0  ;;  %v1306_v33 = vmul.f32 1.442695, %v1291_v23 }
 0x2cd   : > { %v1357_v34 = vsel %vm1227_vm11, %v1319_v25, 0.0  ;;  %v1407_v35 = vrot.slane %v1406_v32, 4  ;;  %v1304_v36 = vmul.f32 1.442695, %v1290_v27 }
 0x2ce   : > { %v1358_v30 = vrot.slane %v1357_v34, 4  ;;  %v1415_v37 = vadd.f32 %v1414_v28, %v1413_v26  ;;  %v1350_v2 = vsel %vm1227_vm11, %v1318_v31, 0.0  ;;  %1826 = vpow2.f32 %v1306_v33 }
 0x2cf   : > { %v1823_v38 = vpop.eup %1822  ;;  %v1351_v39 = vrot.slane %v1350_v2, 4  ;;  %v1408_v40 = vadd.f32 %v1407_v35, %v1406_v32  ;;  %1828 = vpow2.f32 %v1304_v36 }
 0x2d0   : > { %v1509_v41 = vsel %vm1508_vm15, %v1823_v38, %v1507_v3  ;;  %v1416_v42 = vrot.slane %v1415_v37, 2  ;;  %v1359_v43 = vadd.f32 %v1358_v30, %v1357_v34 }
 0x2d1   : > { %v1409_v44 = vrot.slane %v1408_v40, 2  ;;  %v1352_v46 = vadd.f32 %v1351_v39, %v1350_v2 }
 0x2d2   : > { %v1417_v45 = vadd.f32 %v1416_v42, %v1415_v37  ;;  %v1360_v51 = vrot.slane %v1359_v43, 2 }
 0x2d3   : > { %v1825_v47 = vpop.eup %1824  ;;  %v1410_v48 = vadd.f32 %v1409_v44, %v1408_v40  ;;  %v1353_v54 = vrot.slane %v1352_v46, 2 }
 0x2d4   : > { %v2134_v49 = vsel %vm1510_vm0, %v1825_v47, %v1509_v41  ;;  %v1418_v50 = vrot.slane %v1417_v45, 1  ;;  %v1361_v59 = vadd.f32 %v1360_v51, %v1359_v43 }
 0x2d5   : > { %v1411_v52 = vrot.slane %v1410_v48, 1  ;;  %v1354_v61 = vadd.f32 %v1353_v54, %v1352_v46 }
 0x2d6   : > { %v1419_v53 = vadd.f32 %v1418_v50, %v1417_v45  ;;  %v1362_v8 = vrot.slane %v1361_v59, 1 }
 0x2d7   : > { %v1412_v55 = vadd.f32 %v1411_v52, %v1410_v48  ;;  %v1355_v10 = vrot.slane %v1354_v61, 1 }
 0x2d8   : > { %v1827_v56 = vpop.eup %1826  ;;  %1830 = vrcp.f32 %v1419_v53  ;;  %v1363_v29 = vadd.f32 %v1362_v8, %v1361_v59 }
 0x2d9   : > { %v1829_v57 = vpop.eup %1828  ;;  %1832 = vrcp.f32 %v1412_v55  ;;  %v1321_v60 = vmul.f32 %v1827_v56, %v2109_v1  ;;  %v1427_v58 = vsel %vm1227_vm11, %v1827_v56, 0.0  ;;  %v1356_v17 = vadd.f32 %v1355_v10, %v1354_v61 }
 0x2da   : > { %v1428_v62 = vrot.slane %v1427_v58, 4  ;;  %v1320_v63 = vmul.f32 %v1829_v57, %v2109_v1  ;;  %v1420_v0 = vsel %vm1227_vm11, %v1829_v57, 0.0 }
 0x2db   : > { %v1371_v3 = vsel %vm1227_vm11, %v1321_v60, 0.0  ;;  %v1421_v4 = vrot.slane %v1420_v0, 4 }
 0x2dc   : > { %v1372_v5 = vrot.slane %v1371_v3, 4  ;;  %v1429_v6 = vadd.f32 %v1428_v62, %v1427_v58  ;;  %v1364_v7 = vsel %vm1227_vm11, %v1320_v63, 0.0 }
 0x2dd   : > { %v1422_v9 = vadd.f32 %v1421_v4, %v1420_v0  ;;  %v1365_v12 = vrot.slane %v1364_v7, 4 }
 0x2de   : > { %v1430_v11 = vrot.slane %v1429_v6, 2  ;;  %v1373_v13 = vadd.f32 %v1372_v5, %v1371_v3 }
 0x2df   : > { %v1423_v14 = vrot.slane %v1422_v9, 2  ;;  %v1366_v19 = vadd.f32 %v1365_v12, %v1364_v7 }
 0x2e0   : > { %v1431_v15 = vadd.f32 %v1430_v11, %v1429_v6  ;;  %v1374_v22 = vrot.slane %v1373_v13, 2 }
 0x2e1   : > { %v1424_v16 = vadd.f32 %v1423_v14, %v1422_v9  ;;  %v1367_v31 = vrot.slane %v1366_v19, 2 }
 0x2e2   : > { %v1831_v1 = vpop.eup %1830  ;;  %v1432_v18 = vrot.slane %v1431_v15, 1  ;;  %v1375_v32 = vadd.f32 %v1374_v22, %v1373_v13 }
 0x2e3   : > { %v1833_v20 = vpop.eup %1832  ;;  %v1447_v21 = vmul.f32 %v1831_v1, %v1363_v29  ;;  %v1425_v23 = vrot.slane %v1424_v16, 1  ;;  %v1368_v33 = vadd.f32 %v1367_v31, %v1366_v19 }
 0x2e4   : > { %v1446_v24 = vmul.f32 %v1833_v20, %v1356_v17  ;;  %v1433_v25 = vadd.f32 %v1432_v18, %v1431_v15  ;;  %v1376_v34 = vrot.slane %v1375_v32, 1 }
 0x2e5   : > { %v1653_v26 = vmul.f32 -1.442695, %v1447_v21  ;;  %v1426_v27 = vadd.f32 %v1425_v23, %v1424_v16  ;;  %v1369_v35 = vrot.slane %v1368_v33, 1 }
 0x2e6   : > { %v1652_v28 = vmul.f32 -1.442695, %v1446_v24  ;;  %1834 = vrcp.f32 %v1433_v25  ;;  %v1377_v36 = vadd.f32 %v1376_v34, %v1375_v32 }
 0x2e7   : > { %1836 = vpow2.f32 %v1653_v26  ;;  %v1370_v40 = vadd.f32 %v1369_v35, %v1368_v33 }
 0x2e8   : > { %1838 = vpow2.f32 %v1652_v28 }
 0x2e9   : > { %1840 = vrcp.f32 %v1426_v27 }
 0x2f0   : > { %v1835_v30 = vpop.eup %1834 }
 0x2f1   : > { %v1837_v37 = vpop.eup %1836  ;;  %v1449_v2 = vmul.f32 %v1835_v30, %v1377_v36 }
 0x2f2   : > { %v1839_v38 = vpop.eup %1838  ;;  %v1479_v39 = vadd.f32 1.0, %v1837_v37 }
 0x2f3   : > { %v1841_v41 = vpop.eup %1840  ;;  %v1478_v42 = vadd.f32 1.0, %v1839_v38  ;;  %v1655_v43 = vmul.f32 -1.442695, %v1449_v2 }
 0x2f4   : > { %1842 = vrcp.f32 %v1479_v39  ;;  %v1448_v44 = vmul.f32 %v1841_v41, %v1370_v40 }
 0x2f5   : > { %1844 = vrcp.f32 %v1478_v42 }
 0x2f6   : > { %1846 = vpow2.f32 %v1655_v43  ;;  %v1654_v45 = vmul.f32 -1.442695, %v1448_v44 }
 0x2f8   : > { %1848 = vpow2.f32 %v1654_v45 }
 0x2fe   : > { %v1843_v46 = vpop.eup %1842 }
 0x2ff   : > { %v1845_v47 = vpop.eup %1844 }
 0x300   : > { %v1847_v48 = vpop.eup %1846  ;;  %v1513_v50 = vsel %vm1512_vm1, %v1845_v47, %v2134_v49 }
 0x301   : > { %v1515_v51 = vsel %vm1514_vm2, %v1843_v46, %v1513_v50  ;;  %v1481_v53 = vadd.f32 1.0, %v1847_v48 }
 0x302   : > { %v1849_v52 = vpop.eup %1848 }
 0x303   : > { %v1480_v54 = vadd.f32 1.0, %v1849_v52 }
 0x305   : > { %1850 = vrcp.f32 %v1480_v54 }
 0x306   : > { %1852 = vrcp.f32 %v1481_v53 }
 0x30f   : > { %v1851_v55 = vpop.eup %1850 }
 0x310   : > { %v1853_v56 = vpop.eup %1852  ;;  %v1517_v57 = vsel %vm1516_vm3, %v1851_v55, %v1515_v51 }
 0x311   : > { %v1519_v59 = vsel %vm1518_vm4, %v1853_v56, %v1517_v57 }
 0x312   : > { %1521 = vst.msk [vmem:[%s197_s9] sm:$0xff] %vm1227_vm11, %v1519_v59 }
 0x313 PF: > { %s14_s15 = sadd.s32 1, %s1860_s15  }
 0x314   : > { %p11_p5 = scmp.ge.s32.totalorder %s14_s15, 4  }
 0x316   :  { %13 = sbr.rel (!%p11_p5) target bundleno = 1 (0x1), region = 66 }

</bundles_post_ra>
